<compile_context>
chip_gen: v7x
topology: tpu7x:2x2x1
jax: 0.10.0
libtpu: 0.0.40
codegen_flags: <defaults>
</compile_context>

<pallas_src>
import functools

import jax
import jax.numpy as jnp
from jax.experimental import pallas as pl
from jax.experimental.pallas import tpu as pltpu


def _simple_block_kernel(x_ref, wl_ref, bl_ref, wo_ref, bo_ref, out_ref,
                         acc_ref, *, compute_dtype):
    f = pl.program_id(1)

    @pl.when(f == 0)
    def _():
        acc_ref[...] = jnp.zeros_like(acc_ref)

    x = x_ref[...]
    wl = wl_ref[...]
    wo = wo_ref[...]
    if compute_dtype != jnp.float32:
        x = x.astype(compute_dtype)
        wl = wl.astype(compute_dtype)
        wo = wo.astype(compute_dtype)

    # linear slice: H -> TF, bias, relu (bias add / relu stay in f32)
    h = jnp.dot(x, wl, preferred_element_type=jnp.float32) + bl_ref[...]
    h = jnp.maximum(h, 0.0)
    if compute_dtype != jnp.float32:
        h = h.astype(compute_dtype)

    # output slice: TF -> H, accumulated over the ffn grid axis
    acc_ref[...] += jnp.dot(h, wo, preferred_element_type=jnp.float32)

    @pl.when(f == pl.num_programs(1) - 1)
    def _():
        out_ref[...] = (acc_ref[...] + bo_ref[...]).astype(out_ref.dtype)


def _pick_ffn_tile(h4, max_tile):
    """Largest multiple of 128 that divides H4 and is <= max_tile, else H4."""
    if h4 <= max_tile:
        return h4
    start = max_tile - (max_tile % 128)
    for cand in range(start, 0, -128):
        if h4 % cand == 0:
            return cand
    return h4


def simple_block_forward(x, params, *, block_batch=128, block_ffn=512,
                         compute_dtype=jnp.float32):
    """x: [B, H] float32 -> [B, H] float32."""
    B, H = x.shape
    wl, bl, wo, bo = params["wl"], params["bl"], params["wo"], params["bo"]
    H4 = wl.shape[1]

    # Batch tile: multiple of 8 (f32 sublane) or the full batch dimension.
    tb = B if B <= block_batch else block_batch
    # FFN tile: stream the 4H dimension in multiples of 128 lanes.
    tf = _pick_ffn_tile(H4, block_ffn)

    grid = (pl.cdiv(B, tb), pl.cdiv(H4, tf))

    in_specs = [
        pl.BlockSpec((tb, H), lambda b, f: (b, 0)),    # x (constant along f)
        pl.BlockSpec((H, tf), lambda b, f: (0, f)),    # wl slice
        pl.BlockSpec((1, tf), lambda b, f: (0, f)),    # bl slice
        pl.BlockSpec((tf, H), lambda b, f: (f, 0)),    # wo slice
        pl.BlockSpec((1, H), lambda b, f: (0, 0)),     # bo (resident)
    ]
    out_spec = pl.BlockSpec((tb, H), lambda b, f: (b, 0))

    param_bytes = 4 * (H * H4 + H4 + H4 * H + H)
    act_bytes = 4 * (2 * B * H)          # x in + out
    cost = pl.CostEstimate(
        flops=2 * B * (H * H4 + H4 * H),
        transcendentals=0,
        bytes_accessed=param_bytes + act_bytes,
    )

    # double-buffered weight slices + double-buffered x/out tiles
    # + accumulator + [tb, tf] intermediate + slack; clamp to v7x's 64 MiB.
    slice_bytes = 4 * (H * tf + tf + tf * H + H)
    vmem_bytes = (2 * slice_bytes
                  + 2 * (2 * tb * H * 4)
                  + tb * H * 4
                  + tb * tf * 4
                  + (1 << 20))
    vmem_bytes = min(max(vmem_bytes, 8 << 20), 64 << 20)

    return pl.pallas_call(
        functools.partial(_simple_block_kernel, compute_dtype=compute_dtype),
        out_shape=jax.ShapeDtypeStruct((B, H), x.dtype),
        grid=grid,
        in_specs=in_specs,
        out_specs=out_spec,
        scratch_shapes=[pltpu.VMEM((tb, H), jnp.float32)],
        compiler_params=pltpu.CompilerParams(
            dimension_semantics=("parallel", "arbitrary"),
            vmem_limit_bytes=vmem_bytes,
        ),
        cost_estimate=cost,
    )(x, wl, bl, wo, bo)


def init_params(key, hidden_size):
    """PyTorch nn.Linear default init, weights stored as [in, out]."""
    H, H4 = hidden_size, 4 * hidden_size

    def lin(k, fan_in, fan_out):
        kw, kb = jax.random.split(k)
        bound = 1.0 / jnp.sqrt(fan_in)
        w = jax.random.uniform(kw, (fan_in, fan_out), jnp.float32, -bound, bound)
        b = jax.random.uniform(kb, (1, fan_out), jnp.float32, -bound, bound)
        return w, b

    k1, k2 = jax.random.split(key)
    wl, bl = lin(k1, H, H4)     # self.linear : H -> 4H
    wo, bo = lin(k2, H4, H)     # self.output : 4H -> H
    return {"wl": wl, "bl": bl, "wo": wo, "bo": bo}


def reference_forward(x, p):
    h = jnp.maximum(x @ p["wl"] + p["bl"], 0.0)
    return h @ p["wo"] + p["bo"]


if __name__ == "__main__":
    batch = 8
    hidden_size = 32

    key = jax.random.PRNGKey(0)
    k_x, k_p = jax.random.split(key)
    x = jax.random.normal(k_x, (batch, hidden_size), jnp.float32)
    params = init_params(k_p, hidden_size)

    out = simple_block_forward(x, params)
    out = jax.block_until_ready(out)

    ref = reference_forward(x, params)
    assert out.shape == (batch, hidden_size)
    assert jnp.allclose(out, ref, atol=1e-4, rtol=1e-4)

    print("KERNEL_OK")
</pallas_src>

<mosaic_0001>
module attributes {stable_mosaic.version = 11 : i64} {
  func.func @_simple_block_kernel(%arg0: i32, %arg1: i32, %arg2: memref<8x32xf32, #tpu.memory_space<vmem>>, %arg3: memref<32x128xf32, #tpu.memory_space<vmem>>, %arg4: memref<1x128xf32, #tpu.memory_space<vmem>>, %arg5: memref<128x32xf32, #tpu.memory_space<vmem>>, %arg6: memref<1x32xf32, #tpu.memory_space<vmem>>, %arg7: memref<8x32xf32, #tpu.memory_space<vmem>>, %arg8: memref<8x32xf32, #tpu.memory_space<vmem>>) attributes {dimension_semantics = [#tpu.dimension_semantics<parallel>, #tpu.dimension_semantics<arbitrary>], iteration_bounds = array<i64: 1, 1>, scalar_prefetch = 0 : i64, scratch_operands = 1 : i64, tpu.core_type = #tpu.core_type<tc>, window_params = [{transform_indices = @transform_0, window_bounds = array<i64: 8, 32>}, {transform_indices = @transform_1, window_bounds = array<i64: 32, 128>}, {transform_indices = @transform_2, window_bounds = array<i64: 1, 128>}, {transform_indices = @transform_3, window_bounds = array<i64: 128, 32>}, {pipeline_mode = #tpu.pipeline_mode<synchronous>, transform_indices = @transform_4, window_bounds = array<i64: 1, 32>}, {transform_indices = @transform_5, window_bounds = array<i64: 8, 32>}]} {
    %c0_i32 = arith.constant 0 : i32
    %0 = arith.cmpi eq, %arg1, %c0_i32 : i32
    %1 = arith.extui %0 : i1 to i32
    %c0_i32_0 = arith.constant 0 : i32
    %2 = arith.cmpi ne, %1, %c0_i32_0 : i32
    scf.if %2 {
      %cst_16 = arith.constant 0.000000e+00 : f32
      %19 = vector.broadcast %cst_16 : f32 to vector<8x32xf32>
      %c0_17 = arith.constant 0 : index
      %c0_18 = arith.constant 0 : index
      %20 = vector.load %arg8[%c0_17, %c0_18] : memref<8x32xf32, #tpu.memory_space<vmem>>, vector<8x32xf32>
      tpu.vector_store %arg8[%c0_17, %c0_18], %19 {strides = array<i32>} : memref<8x32xf32, #tpu.memory_space<vmem>>, vector<8x32xf32>,
    } else {
    }
    %c0 = arith.constant 0 : index
    %c0_1 = arith.constant 0 : index
    %3 = vector.load %arg2[%c0, %c0_1] : memref<8x32xf32, #tpu.memory_space<vmem>>, vector<8x32xf32>
    %c0_2 = arith.constant 0 : index
    %c0_3 = arith.constant 0 : index
    %4 = vector.load %arg3[%c0_2, %c0_3] : memref<32x128xf32, #tpu.memory_space<vmem>>, vector<32x128xf32>
    %c0_4 = arith.constant 0 : index
    %c0_5 = arith.constant 0 : index
    %5 = vector.load %arg5[%c0_4, %c0_5] : memref<128x32xf32, #tpu.memory_space<vmem>>, vector<128x32xf32>
    %cst = arith.constant dense<0.000000e+00> : vector<8x128xf32>
    %6 = tpu.matmul %3, %4, %cst {dimension_numbers = #tpu.dot_dimension_numbers<[1], [0], [0], [1], [0, 0, 1, 1], [], []>} : vector<8x32xf32>, vector<32x128xf32>, vector<8x128xf32> -> vector<8x128xf32>
    %c0_6 = arith.constant 0 : index
    %c0_7 = arith.constant 0 : index
    %7 = vector.load %arg4[%c0_6, %c0_7] : memref<1x128xf32, #tpu.memory_space<vmem>>, vector<1x128xf32>
    %8 = vector.broadcast %7 : vector<1x128xf32> to vector<8x128xf32>
    %9 = arith.addf %6, %8 : vector<8x128xf32>
    %cst_8 = arith.constant 0.000000e+00 : f32
    %10 = vector.broadcast %cst_8 : f32 to vector<8x128xf32>
    %11 = arith.maximumf %9, %10 : vector<8x128xf32>
    %c0_9 = arith.constant 0 : index
    %c0_10 = arith.constant 0 : index
    %12 = vector.load %arg8[%c0_9, %c0_10] : memref<8x32xf32, #tpu.memory_space<vmem>>, vector<8x32xf32>
    %cst_11 = arith.constant dense<0.000000e+00> : vector<8x32xf32>
    %13 = tpu.matmul %11, %5, %cst_11 {dimension_numbers = #tpu.dot_dimension_numbers<[1], [0], [0], [1], [0, 0, 1, 1], [], []>} : vector<8x128xf32>, vector<128x32xf32>, vector<8x32xf32> -> vector<8x32xf32>
    %14 = arith.addf %12, %13 : vector<8x32xf32>
    %c0_12 = arith.constant 0 : index
    %c0_13 = arith.constant 0 : index
    %15 = vector.load %arg8[%c0_12, %c0_13] : memref<8x32xf32, #tpu.memory_space<vmem>>, vector<8x32xf32>
    tpu.vector_store %arg8[%c0_12, %c0_13], %14 {strides = array<i32>} : memref<8x32xf32, #tpu.memory_space<vmem>>, vector<8x32xf32>,
    %c0_i32_14 = arith.constant 0 : i32
    %16 = arith.cmpi eq, %arg1, %c0_i32_14 : i32
    %17 = arith.extui %16 : i1 to i32
    %c0_i32_15 = arith.constant 0 : i32
    %18 = arith.cmpi ne, %17, %c0_i32_15 : i32
    scf.if %18 {
      %c0_16 = arith.constant 0 : index
      %c0_17 = arith.constant 0 : index
      %19 = vector.load %arg8[%c0_16, %c0_17] : memref<8x32xf32, #tpu.memory_space<vmem>>, vector<8x32xf32>
      %c0_18 = arith.constant 0 : index
      %c0_19 = arith.constant 0 : index
      %20 = vector.load %arg6[%c0_18, %c0_19] : memref<1x32xf32, #tpu.memory_space<vmem>>, vector<1x32xf32>
      %21 = vector.broadcast %20 : vector<1x32xf32> to vector<8x32xf32>
      %22 = arith.addf %19, %21 : vector<8x32xf32>
      %c0_20 = arith.constant 0 : index
      %c0_21 = arith.constant 0 : index
      %23 = vector.load %arg7[%c0_20, %c0_21] : memref<8x32xf32, #tpu.memory_space<vmem>>, vector<8x32xf32>
      tpu.vector_store %arg7[%c0_20, %c0_21], %22 {strides = array<i32>} : memref<8x32xf32, #tpu.memory_space<vmem>>, vector<8x32xf32>,
    } else {
    }
    return
  }
  func.func @transform_0(%arg0: i32, %arg1: i32) -> (i32, i32) {
    %c0_i32 = arith.constant 0 : i32
    %c0_i32_0 = arith.constant 0 : i32
    return %arg0, %c0_i32 : i32, i32
  }
  func.func @transform_1(%arg0: i32, %arg1: i32) -> (i32, i32) {
    %c0_i32 = arith.constant 0 : i32
    %c0_i32_0 = arith.constant 0 : i32
    return %c0_i32, %arg1 : i32, i32
  }
  func.func @transform_2(%arg0: i32, %arg1: i32) -> (i32, i32) {
    %c0_i32 = arith.constant 0 : i32
    %c0_i32_0 = arith.constant 0 : i32
    return %c0_i32, %arg1 : i32, i32
  }
  func.func @transform_3(%arg0: i32, %arg1: i32) -> (i32, i32) {
    %c0_i32 = arith.constant 0 : i32
    %c0_i32_0 = arith.constant 0 : i32
    return %arg1, %c0_i32 : i32, i32
  }
  func.func @transform_4(%arg0: i32, %arg1: i32) -> (i32, i32) {
    %c0_i32 = arith.constant 0 : i32
    %c0_i32_0 = arith.constant 0 : i32
    %c0_i32_1 = arith.constant 0 : i32
    return %c0_i32, %c0_i32_0 : i32, i32
  }
  func.func @transform_5(%arg0: i32, %arg1: i32) -> (i32, i32) {
    %c0_i32 = arith.constant 0 : i32
    %c0_i32_0 = arith.constant 0 : i32
    return %arg0, %c0_i32 : i32, i32
  }
}

</mosaic_0001>

<bundles_post_ra>
// kernel: tpu_custom_call.1
= control target key start
LH: loop header
LB: loop body
LE: loop exit
PB: predicated region body
PF: predicated region fallthrough
CT: control target
= control target key end

     0   :  { %v359_v3 = vmov 0.0|0.0   ;;  %vm360_vm0 = vmmov 0   ;;  %v361_v6 = vmov 0.0   ;;  %vm25_vm1 = vcmask 261120   ;;  %s478_s0 = inlined_call_operand.vmem [shape: f32[8,32], index: 0, kind: input, shape index: {}]   ;;  %s479_s1 = inlined_call_operand.vmem [shape: f32[32,128], index: 1, kind: input, shape index: {}]   ;;  %s480_s2 = inlined_call_operand.vmem [shape: f32[1,128], index: 2, kind: input, shape index: {}]   ;;  %s481_s3 = inlined_call_operand.vmem [shape: f32[128,32], index: 3, kind: input, shape index: {}]   ;;  %s482_s4 = inlined_call_operand.vmem [shape: f32[1,32], index: 4, kind: input, shape index: {}]   ;;  %s483_s5 = inlined_call_operand.hbm [shape: f32[8,32], index: 5, kind: output, shape index: {}]  }
   0x1   :  { %v28_v0 = vld [vmem:[%s479_s1] sm:$0xff]  ;;  %v29_v1 = vld [vmem:[%s479_s1 + $0x8] sm:$0xff]  ;;  %v30_v2 = vld [vmem:[%s479_s1 + $0x10] sm:$0xff]  ;;  %301 = vmatprep.subr.bf16.mxu0 %v359_v3  ;;  %263 = vmatprep.mubr.msk.f32.mxu0 %vm360_vm0, %v361_v6  ;;  %26 = vst.msk [vmem:[#allocation2] sm:$0xff] %vm25_vm1, %v361_v6 }
   0x2   :  { %v302_v4 = vpack.c.bf16 %v29_v1, %v28_v0  ;;  %v31_v5 = vld [vmem:[%s479_s1 + $0x18] sm:$0xff]  ;;  %v32_v7 = vld [vmem:[%s481_s3] sm:$0xff]  ;;  %307 = vmatprep.subr.bf16.mxu1 %v359_v3  ;;  %v33_v8 = vld [vmem:[%s481_s3 + $0x8] sm:$0xff]  ;;  %298 = vmatprep.mubr.msk.f32.mxu1 %vm360_vm0, %v361_v6 }
   0x3   :  { %v34_v9 = vld [vmem:[%s481_s3 + $0x10] sm:$0xff]  ;;  %v35_v10 = vld [vmem:[%s481_s3 + $0x18] sm:$0xff]  ;;  %v305_v11 = vpack.c.bf16 %v31_v5, %v30_v2  ;;  %v308_v12 = vpack.c.bf16 %v33_v8, %v32_v7  ;;  %v36_v14 = vld [vmem:[%s481_s3 + $0x20] sm:$0xff] }
   0x4   :  { %303 = vmatpush3.bf16.msra.mxu0 %v302_v4  ;;  %v311_v13 = vpack.c.bf16 %v35_v10, %v34_v9  ;;  %v37_v15 = vld [vmem:[%s481_s3 + $0x28] sm:$0xff] }
   0x5   :  { %304 = vmatprep.subr.bf16.mxu0 %v359_v3  ;;  %309 = vmatpush3.bf16.msra.mxu1 %v308_v12 }
   0x6   :  { %310 = vmatprep.subr.bf16.mxu1 %v359_v3 }
   0x7   :  { %10 = vsyncpa [#allocation4], 0  ;;  %v27_v16 = vld [vmem:[%s478_s0] sm:$0xff]  ;;  %v314_v17 = vpack.c.bf16 %v37_v15, %v36_v14  ;;  %v38_v18 = vld [vmem:[%s481_s3 + $0x30] sm:$0xff] }
   0x8   :  { %306 = vmatpush3.bf16.msra.mxu0 %v305_v11  ;;  %v39_v19 = vld [vmem:[%s481_s3 + $0x38] sm:$0xff]  ;;  %v40_v21 = vld [vmem:[%s481_s3 + $0x40] sm:$0xff]  ;;  %v41_v22 = vld [vmem:[%s481_s3 + $0x48] sm:$0xff] }
   0x9   :  { %312 = vmatpush3.bf16.msra.mxu1 %v311_v13  ;;  %v317_v20 = vpack.c.bf16 %v39_v19, %v38_v18  ;;  %v320_v23 = vpack.c.bf16 %v41_v22, %v40_v21  ;;  %v42_v24 = vld [vmem:[%s481_s3 + $0x50] sm:$0xff]  ;;  %v43_v25 = vld [vmem:[%s481_s3 + $0x58] sm:$0xff]  ;;  %v44_v27 = vld [vmem:[%s481_s3 + $0x60] sm:$0xff] }
   0xa   :  { %313 = vmatprep.subr.bf16.mxu1 %v359_v3  ;;  %v323_v26 = vpack.c.bf16 %v43_v25, %v42_v24  ;;  %v45_v28 = vld [vmem:[%s481_s3 + $0x68] sm:$0xff]  ;;  %v46_v30 = vld [vmem:[%s481_s3 + $0x70] sm:$0xff]  ;;  %v47_v31 = vld [vmem:[%s481_s3 + $0x78] sm:$0xff]  ;;  %s362_s3 = smov [#allocation3]  }
   0xb   :  { %264 = vmatmul.mubr.msk.f32.vlgmr.msra.gmra.mrb[0].mxu0 %vm25_vm1, %v27_v16  ;;  %v326_v29 = vpack.c.bf16 %v45_v28, %v44_v27  ;;  %v329_v32 = vpack.c.bf16 %v47_v31, %v46_v30  ;;  %v230_v33 = vld [vmem:[%s480_s2] ss:$0 sm:$0xff]  ;;  %s222_s11 = sshll.u32 %s362_s3, 4  ;;  %s223_s11 = int_to_ptr.vmem [resolvable:$true] %s222_s11 }
   0xc   :  { %v130_v38 = vld [vmem:[#allocation2] sm:$0xff]  ;;  %s335_s2 = scalar_lea.vmem %s223_s11, 128  ;;  %p340_p1 = scmp.lt.s32.totalorder %s223_s11, %s223_s11 }
   0xd   :  { %315 = vmatpush3.bf16.msra.mxu1 %v314_v17  ;;  %v232_v42 = vld [vmem:[%s482_s4] ss:$0 sm:$0xff]  ;;  %p336_p0 = scmp.ne.s32.totalorder %s223_s11, %s335_s2  ;;  %p341_p2 = scmp.lt.s32.totalorder %s335_s2, %s335_s2 }
   0xe   :  { %316 = vmatprep.subr.bf16.mxu1 %v359_v3 }
   0xf   :  { %p342_p3 = por %p341_p2, %p340_p1 }
  0x11   :  { %318 = vmatpush3.bf16.msra.mxu1 %v317_v20  ;;  %p343_p4 = pnand %p342_p3, %p336_p0 }
  0x12   :  { %319 = vmatprep.subr.bf16.mxu1 %v359_v3 }
  0x15   :  { %321 = vmatpush3.bf16.msra.mxu1 %v320_v23 }
  0x16   :  { %322 = vmatprep.subr.bf16.mxu1 %v359_v3 }
  0x19   :  { %324 = vmatpush3.bf16.msra.mxu1 %v323_v26 }
  0x1a   :  { %325 = vmatprep.subr.bf16.mxu1 %v359_v3 }
  0x1d   :  { %327 = vmatpush3.bf16.msra.mxu1 %v326_v29 }
  0x1e   :  { %328 = vmatprep.subr.bf16.mxu1 %v359_v3 }
  0x21   :  { %330 = vmatpush3.bf16.msra.mxu1 %v329_v32 }
  0xde   :  { %v125_v34 = vpop.f32.mrb[0].mxu0 }
  0xdf   :  { %v126_v35 = vadd.f32 %v230_v33, %v125_v34  ;;  %v265_v36 = vpop.f32.mrb[1].mxu0 }
  0xe1   :  { %v129_v37 = vmax.f32 %v126_v35, 0.0 }
  0xe3   :  { %299 = vmatmul.mubr.f32.vlgmr.msra.gmra.mrb[0].mxu1 %v129_v37 }
 0x1b6   :  { %v197_v39 = vpop.f32.mrb[0].mxu1 }
 0x1b7   :  { %v201_v40 = vadd.f32 %v197_v39, %v130_v38  ;;  %v300_v41 = vpop.f32.mrb[1].mxu1 }
 0x1b9   :  { %202 = vst.msk [vmem:[#allocation2] sm:$0xff] %vm25_vm1, %v201_v40 }
 0x1c0   :  { %v206_v43 = vld [vmem:[#allocation2] sm:$0xff] }
 0x1c1   :  { %v214_v44 = vadd.f32 %v232_v42, %v206_v43 }
 0x1c3   :  { %215 = vst.msk [vmem:[#allocation3] sm:$0xff] %vm25_vm1, %v214_v44 }
 0x1c4   :  { %346 = shalt.err (!%p343_p4)
}
 0x1c5   :  { %s347_s14 = scalar_lea.hbm %s483_s5, 128 }
 0x1c6   :  { %p348_p5 = scmp.ne.s32.totalorder %s483_s5, %s347_s14  ;;  %p351_p6 = scmp.lt.u32.totalorder %s347_s14, %s483_s5 }
 0x1c8   :  { %p353_p7 = pnand %p351_p6, %p348_p5 }
 0x1ca   :  { %356 = shalt.err (!%p353_p7)
}
 0x1cb   :  { %225 = dma.vmem_to_hbm [thread:$0]  %s223_s11, 128, %s483_s5, [#allocation4]  }
 0x1cc   :  { %357 = dma.done.wait [#allocation4], 128  }
 0x1cd   :  { %358 = vsyncadd [#allocation4], 4294967168 }
 0x1ce   :  { %229 = vsyncpa [#allocation4], 1 }

</bundles_post_ra>
